<compile_context>
chip_gen: v7x
topology: tpu7x:2x2x1
jax: 0.10.0
libtpu: 0.0.40
codegen_flags: <defaults>
</compile_context>

<pallas_src>
import jax
import jax.numpy as jnp
from jax.experimental import pallas as pl
from jax.experimental.pallas import tpu as pltpu

EPS = 1e-7
PAD_ID = 1          # event_ids.ne(1) -> attention mask
NEG_INF = -1e9      # logit value for padded (fake) classes
LANES = 128
SUBLANES = 8


def _round_up(x, m):
    return ((x + m - 1) // m) * m


def _encoder_block(ids, table, w1, b1, w2, b2):
    """Fused gather + masked mean pool (one MXU contraction) -> tanh dense ->
    logits -> softmax.  `ids` is (TB, S) int32, `table` is (V, H); the class
    dim of w2/b2 is pre-padded to a multiple of 128 lanes with NEG_INF logits,
    so the padded classes carry exactly zero softmax mass."""
    TB, S = ids.shape
    V = table.shape[0]

    # attention mask computed in-kernel (saves a [B, S] f32 DMA stream)
    mask = (ids != PAD_ID).astype(jnp.float32)                        # (TB, S)
    inv_count = 1.0 / (jnp.sum(mask, axis=-1, keepdims=True) + EPS)   # (TB, 1)
    w = mask * inv_count                                              # (TB, S)

    # A[b, v] = sum_s w[b, s] * [ids[b, s] == v], so pooled = A @ table equals
    # the masked mean of the gathered embeddings.  Both the gather and the
    # S-reduction are routed through the MXU / a single select + reduce.
    vocab_iota = jax.lax.broadcasted_iota(jnp.int32, (TB, S, V), 2)
    weighted = jnp.where(ids[:, :, None] == vocab_iota, w[:, :, None], 0.0)
    a = jnp.sum(weighted, axis=1)                                     # (TB, V)
    pooled = jnp.dot(a, table, preferred_element_type=jnp.float32)    # (TB, H)

    h = jnp.tanh(jnp.dot(pooled, w1, preferred_element_type=jnp.float32) + b1)
    logits = jnp.dot(h, w2, preferred_element_type=jnp.float32) + b2  # (TB, CP)

    mx = jnp.max(logits, axis=-1, keepdims=True)
    e = jnp.exp(logits - mx)
    # exact division (not pl.reciprocal(approx=True)) to keep 1e-5 parity with
    # the f32 reference; the approx EUP path has ~2^-12 relative error.
    return e / jnp.sum(e, axis=-1, keepdims=True)                     # (TB, CP)


def probs_kernel(ids_ref, table_ref, w1_ref, b1_ref, w2_ref, b2_ref, probs_ref):
    probs_ref[...] = _encoder_block(
        ids_ref[...], table_ref[...], w1_ref[...], b1_ref[...],
        w2_ref[...], b2_ref[...])


def loss_partial_kernel(ids_ref, table_ref, w1_ref, b1_ref, w2_ref, b2_ref,
                        prior_ref, partial_ref):
    probs = _encoder_block(
        ids_ref[...], table_ref[...], w1_ref[...], b1_ref[...],
        w2_ref[...], b2_ref[...])
    prior = prior_ref[...].astype(jnp.float32)
    prior = prior / (jnp.sum(prior, axis=-1, keepdims=True) + EPS)
    kl = prior * jnp.log(prior + EPS) - prior * jnp.log(probs + EPS)
    # Padded batch rows have an all-zero prior and padded class columns have
    # prior == 0, so both contribute exactly 0 to the partial sum.  Store the
    # per-tile partial sum as a full lane-dense (8, 128) splat -> unmasked vst;
    # the wrapper picks element [0, 0] of each block and finishes the mean.
    partial_ref[...] = jnp.zeros((SUBLANES, LANES), jnp.float32) + jnp.sum(kl)


class PallasPriorEstimator:
    """JAX/Pallas replacement for estimator.Model with a synthetic encoder."""

    def __init__(self, vocab_size, hidden, hidden2, num_classes, key,
                 batch_tile=128):
        k0, k1, k2, k3, k4 = jax.random.split(key, 5)
        self.embedding = 0.1 * jax.random.normal(
            k0, (vocab_size, hidden), jnp.float32)
        self.w1 = 0.1 * jax.random.normal(k1, (hidden, hidden2), jnp.float32)
        self.b1 = 0.1 * jax.random.normal(k2, (1, hidden2), jnp.float32)
        self.w2 = 0.1 * jax.random.normal(k3, (hidden2, num_classes), jnp.float32)
        self.b2 = 0.1 * jax.random.normal(k4, (1, num_classes), jnp.float32)
        self.num_classes = num_classes
        # batch tile must be a sublane multiple; 128/256 fills the MXU rows
        self.batch_tile = _round_up(max(batch_tile, SUBLANES), SUBLANES)

        # lane-dense class dimension: pad weights once at init.  Padded classes
        # get a -1e9 bias -> exp() underflows to 0 -> zero softmax mass.
        cp = _round_up(max(num_classes, LANES), LANES)
        self.class_pad = cp
        self.w2p = jnp.pad(self.w2, ((0, 0), (0, cp - num_classes)))
        self.b2p = jnp.pad(self.b2, ((0, 0), (0, cp - num_classes)),
                           constant_values=NEG_INF)

    def _in_specs(self, tb, seq_len):
        return [
            pl.BlockSpec((tb, seq_len), lambda i: (i, 0)),          # event ids
            pl.BlockSpec(self.embedding.shape, lambda i: (0, 0)),   # table
            pl.BlockSpec(self.w1.shape, lambda i: (0, 0)),
            pl.BlockSpec(self.b1.shape, lambda i: (0, 0)),
            pl.BlockSpec(self.w2p.shape, lambda i: (0, 0)),
            pl.BlockSpec(self.b2p.shape, lambda i: (0, 0)),
        ]

    def __call__(self, event_ids, prior=None):
        B, S = event_ids.shape
        CP = self.class_pad

        tb = min(self.batch_tile, _round_up(B, SUBLANES))
        bp = _round_up(B, tb)
        nb = bp // tb

        ids = event_ids.astype(jnp.int32)
        if bp != B:
            # padded rows are all PAD_ID -> zero attention mask -> harmless
            ids = jnp.pad(ids, ((0, bp - B), (0, 0)), constant_values=PAD_ID)

        in_specs = self._in_specs(tb, S)
        params = (ids, self.embedding, self.w1, self.b1, self.w2p, self.b2p)

        if prior is None:
            probs_padded = pl.pallas_call(
                probs_kernel,
                out_shape=jax.ShapeDtypeStruct((bp, CP), jnp.float32),
                grid=(nb,),
                in_specs=in_specs,
                out_specs=pl.BlockSpec((tb, CP), lambda i: (i, 0)),
                compiler_params=pltpu.CompilerParams(
                    dimension_semantics=("parallel",)),
            )(*params)
            return probs_padded[:B, :self.num_classes]
        else:
            prior = prior.astype(jnp.float32)
            prior_padded = jnp.pad(
                prior, ((0, bp - B), (0, CP - self.num_classes)))
            # Each tile writes its own lane-dense (8, 128) partial-sum block;
            # the grid axis stays "parallel" (megacore-shardable on v7x).
            partials = pl.pallas_call(
                loss_partial_kernel,
                out_shape=jax.ShapeDtypeStruct((nb * SUBLANES, LANES),
                                               jnp.float32),
                grid=(nb,),
                in_specs=in_specs + [pl.BlockSpec((tb, CP), lambda i: (i, 0))],
                out_specs=pl.BlockSpec((SUBLANES, LANES), lambda i: (i, 0)),
                compiler_params=pltpu.CompilerParams(
                    dimension_semantics=("parallel",)),
            )(*params, prior_padded)
            # one scalar per tile (the splat's [0, 0] entry); finish the mean
            return jnp.sum(partials[::SUBLANES, 0]) / float(B)


def _reference(model, event_ids, prior=None):
    """Pure-JAX reference mirroring the PyTorch forward."""
    emb = jnp.take(model.embedding, event_ids, axis=0)             # [B, S, H]
    mask = (event_ids != PAD_ID).astype(jnp.float32)[:, :, None]   # [B, S, 1]
    pooled = jnp.sum(emb * mask, axis=1) / (jnp.sum(mask, axis=1) + EPS)
    h = jnp.tanh(pooled @ model.w1 + model.b1)
    logits = h @ model.w2 + model.b2
    mx = jnp.max(logits, axis=-1, keepdims=True)
    e = jnp.exp(logits - mx)
    probs = e / jnp.sum(e, axis=-1, keepdims=True)
    if prior is None:
        return probs
    prior = prior.astype(jnp.float32)
    prior = prior / (jnp.sum(prior, axis=-1, keepdims=True) + EPS)
    kl = prior * jnp.log(prior + EPS) - prior * jnp.log(probs + EPS)
    return jnp.mean(jnp.sum(kl, axis=-1))


if __name__ == "__main__":
    key = jax.random.PRNGKey(0)
    k_model, k_ids, k_prior = jax.random.split(key, 3)

    # small shapes; batch_tile=8 so the 16-row batch exercises a 2-step grid
    B, S, V, H, H2, C = 16, 16, 64, 32, 32, 16
    model = PallasPriorEstimator(V, H, H2, C, k_model, batch_tile=8)

    event_ids = jax.random.randint(k_ids, (B, S), 0, V, dtype=jnp.int32)
    # ensure some padding tokens (id == 1) exist so the mask is nontrivial
    event_ids = event_ids.at[:, -3:].set(PAD_ID)
    prior = jax.random.uniform(k_prior, (B, C), jnp.float32) + 0.05

    # path 1: no prior -> probs
    probs = jax.block_until_ready(model(event_ids))

    # path 2: prior given -> scalar KL-style loss
    loss = jax.block_until_ready(model(event_ids, prior))

    # sanity checks against the pure-JAX reference
    ref_probs = _reference(model, event_ids)
    ref_loss = _reference(model, event_ids, prior)
    assert probs.shape == (B, C)
    assert jnp.allclose(probs, ref_probs, atol=1e-5, rtol=1e-5)
    assert jnp.allclose(loss, ref_loss, atol=1e-5, rtol=1e-5)

    print("KERNEL_OK")
</pallas_src>

<mosaic_0001>
module attributes {stable_mosaic.version = 11 : i64} {
  func.func @probs_kernel(%arg0: i32, %arg1: memref<8x16xi32, #tpu.memory_space<vmem>>, %arg2: memref<64x32xf32, #tpu.memory_space<vmem>>, %arg3: memref<32x32xf32, #tpu.memory_space<vmem>>, %arg4: memref<1x32xf32, #tpu.memory_space<vmem>>, %arg5: memref<32x128xf32, #tpu.memory_space<vmem>>, %arg6: memref<1x128xf32, #tpu.memory_space<vmem>>, %arg7: memref<8x128xf32, #tpu.memory_space<vmem>>) attributes {dimension_semantics = [#tpu.dimension_semantics<parallel>], iteration_bounds = array<i64: 2>, scalar_prefetch = 0 : i64, scratch_operands = 0 : i64, tpu.core_type = #tpu.core_type<tc>, window_params = [{transform_indices = @transform_0, window_bounds = array<i64: 8, 16>}, {pipeline_mode = #tpu.pipeline_mode<synchronous>, transform_indices = @transform_1, window_bounds = array<i64: 64, 32>}, {pipeline_mode = #tpu.pipeline_mode<synchronous>, transform_indices = @transform_2, window_bounds = array<i64: 32, 32>}, {pipeline_mode = #tpu.pipeline_mode<synchronous>, transform_indices = @transform_3, window_bounds = array<i64: 1, 32>}, {pipeline_mode = #tpu.pipeline_mode<synchronous>, transform_indices = @transform_4, window_bounds = array<i64: 32, 128>}, {pipeline_mode = #tpu.pipeline_mode<synchronous>, transform_indices = @transform_5, window_bounds = array<i64: 1, 128>}, {transform_indices = @transform_6, window_bounds = array<i64: 8, 128>}]} {
    %c0 = arith.constant 0 : index
    %c0_0 = arith.constant 0 : index
    %0 = vector.load %arg1[%c0, %c0_0] : memref<8x16xi32, #tpu.memory_space<vmem>>, vector<8x16xi32>
    %c0_1 = arith.constant 0 : index
    %c0_2 = arith.constant 0 : index
    %1 = vector.load %arg2[%c0_1, %c0_2] : memref<64x32xf32, #tpu.memory_space<vmem>>, vector<64x32xf32>
    %c0_3 = arith.constant 0 : index
    %c0_4 = arith.constant 0 : index
    %2 = vector.load %arg3[%c0_3, %c0_4] : memref<32x32xf32, #tpu.memory_space<vmem>>, vector<32x32xf32>
    %c0_5 = arith.constant 0 : index
    %c0_6 = arith.constant 0 : index
    %3 = vector.load %arg4[%c0_5, %c0_6] : memref<1x32xf32, #tpu.memory_space<vmem>>, vector<1x32xf32>
    %c0_7 = arith.constant 0 : index
    %c0_8 = arith.constant 0 : index
    %4 = vector.load %arg5[%c0_7, %c0_8] : memref<32x128xf32, #tpu.memory_space<vmem>>, vector<32x128xf32>
    %c0_9 = arith.constant 0 : index
    %c0_10 = arith.constant 0 : index
    %5 = vector.load %arg6[%c0_9, %c0_10] : memref<1x128xf32, #tpu.memory_space<vmem>>, vector<1x128xf32>
    %c1_i32 = arith.constant 1 : i32
    %6 = vector.broadcast %c1_i32 : i32 to vector<8x16xi32>
    %7 = arith.cmpi ne, %0, %6 : vector<8x16xi32>
    %8 = arith.extui %7 : vector<8x16xi1> to vector<8x16xi32>
    %9 = arith.sitofp %8 : vector<8x16xi32> to vector<8x16xf32>
    %cst = arith.constant dense<0.000000e+00> : vector<8xf32>
    %10 = vector.multi_reduction <add>, %9, %cst [1] : vector<8x16xf32> to vector<8xf32>
    %11 = vector.shape_cast %10 : vector<8xf32> to vector<8x1xf32>
    %cst_11 = arith.constant 1.000000e-07 : f32
    %12 = vector.broadcast %cst_11 : f32 to vector<8x1xf32>
    %13 = arith.addf %11, %12 : vector<8x1xf32>
    %cst_12 = arith.constant 1.000000e+00 : f32
    %14 = vector.broadcast %cst_12 : f32 to vector<8x1xf32>
    %15 = arith.divf %14, %13 : vector<8x1xf32>
    %16 = vector.broadcast %15 : vector<8x1xf32> to vector<8x16xf32>
    %17 = arith.mulf %9, %16 : vector<8x16xf32>
    %18 = tpu.iota {dimensions = array<i32: 2>} : vector<8x16x64xi32>
    %19 = vector.shape_cast %0 : vector<8x16xi32> to vector<8x16x1xi32>
    %20 = vector.broadcast %19 : vector<8x16x1xi32> to vector<8x16x64xi32>
    %21 = arith.cmpi eq, %20, %18 : vector<8x16x64xi32>
    %22 = vector.shape_cast %17 : vector<8x16xf32> to vector<8x16x1xf32>
    %cst_13 = arith.constant 0.000000e+00 : f32
    %23 = vector.shape_cast %22 : vector<8x16x1xf32> to vector<8x16x1xf32>
    %24 = vector.broadcast %23 : vector<8x16x1xf32> to vector<8x16x64xf32>
    %25 = vector.broadcast %cst_13 : f32 to vector<8x16x64xf32>
    %26 = arith.select %21, %24, %25 : vector<8x16x64xi1>, vector<8x16x64xf32>
    %cst_14 = arith.constant dense<0.000000e+00> : vector<8x64xf32>
    %27 = vector.multi_reduction <add>, %26, %cst_14 [1] : vector<8x16x64xf32> to vector<8x64xf32>
    %cst_15 = arith.constant dense<0.000000e+00> : vector<8x32xf32>
    %28 = tpu.matmul %27, %1, %cst_15 {dimension_numbers = #tpu.dot_dimension_numbers<[1], [0], [0], [1], [0, 0, 1, 1], [], []>} : vector<8x64xf32>, vector<64x32xf32>, vector<8x32xf32> -> vector<8x32xf32>
    %cst_16 = arith.constant dense<0.000000e+00> : vector<8x32xf32>
    %29 = tpu.matmul %28, %2, %cst_16 {dimension_numbers = #tpu.dot_dimension_numbers<[1], [0], [0], [1], [0, 0, 1, 1], [], []>} : vector<8x32xf32>, vector<32x32xf32>, vector<8x32xf32> -> vector<8x32xf32>
    %30 = vector.broadcast %3 : vector<1x32xf32> to vector<8x32xf32>
    %31 = arith.addf %29, %30 : vector<8x32xf32>
    %32 = math.tanh %31 : vector<8x32xf32>
    %cst_17 = arith.constant dense<0.000000e+00> : vector<8x128xf32>
    %33 = tpu.matmul %32, %4, %cst_17 {dimension_numbers = #tpu.dot_dimension_numbers<[1], [0], [0], [1], [0, 0, 1, 1], [], []>} : vector<8x32xf32>, vector<32x128xf32>, vector<8x128xf32> -> vector<8x128xf32>
    %34 = vector.broadcast %5 : vector<1x128xf32> to vector<8x128xf32>
    %35 = arith.addf %33, %34 : vector<8x128xf32>
    %cst_18 = arith.constant dense<0xFF800000> : vector<8xf32>
    %36 = vector.multi_reduction <maximumf>, %35, %cst_18 [1] : vector<8x128xf32> to vector<8xf32>
    %37 = vector.shape_cast %36 : vector<8xf32> to vector<8x1xf32>
    %38 = vector.broadcast %37 : vector<8x1xf32> to vector<8x128xf32>
    %39 = arith.subf %35, %38 : vector<8x128xf32>
    %40 = math.exp %39 : vector<8x128xf32>
    %cst_19 = arith.constant dense<0.000000e+00> : vector<8xf32>
    %41 = vector.multi_reduction <add>, %40, %cst_19 [1] : vector<8x128xf32> to vector<8xf32>
    %42 = vector.shape_cast %41 : vector<8xf32> to vector<8x1xf32>
    %43 = vector.broadcast %42 : vector<8x1xf32> to vector<8x128xf32>
    %44 = arith.divf %40, %43 : vector<8x128xf32>
    %c0_20 = arith.constant 0 : index
    %c0_21 = arith.constant 0 : index
    %45 = vector.load %arg7[%c0_20, %c0_21] : memref<8x128xf32, #tpu.memory_space<vmem>>, vector<8x128xf32>
    tpu.vector_store %arg7[%c0_20, %c0_21], %44 {strides = array<i32>} : memref<8x128xf32, #tpu.memory_space<vmem>>, vector<8x128xf32>,
    return
  }
  func.func @transform_0(%arg0: i32) -> (i32, i32) {
    %c0_i32 = arith.constant 0 : i32
    %c0_i32_0 = arith.constant 0 : i32
    return %arg0, %c0_i32 : i32, i32
  }
  func.func @transform_1(%arg0: i32) -> (i32, i32) {
    %c0_i32 = arith.constant 0 : i32
    %c0_i32_0 = arith.constant 0 : i32
    %c0_i32_1 = arith.constant 0 : i32
    return %c0_i32, %c0_i32_0 : i32, i32
  }
  func.func @transform_2(%arg0: i32) -> (i32, i32) {
    %c0_i32 = arith.constant 0 : i32
    %c0_i32_0 = arith.constant 0 : i32
    %c0_i32_1 = arith.constant 0 : i32
    return %c0_i32, %c0_i32_0 : i32, i32
  }
  func.func @transform_3(%arg0: i32) -> (i32, i32) {
    %c0_i32 = arith.constant 0 : i32
    %c0_i32_0 = arith.constant 0 : i32
    %c0_i32_1 = arith.constant 0 : i32
    return %c0_i32, %c0_i32_0 : i32, i32
  }
  func.func @transform_4(%arg0: i32) -> (i32, i32) {
    %c0_i32 = arith.constant 0 : i32
    %c0_i32_0 = arith.constant 0 : i32
    %c0_i32_1 = arith.constant 0 : i32
    return %c0_i32, %c0_i32_0 : i32, i32
  }
  func.func @transform_5(%arg0: i32) -> (i32, i32) {
    %c0_i32 = arith.constant 0 : i32
    %c0_i32_0 = arith.constant 0 : i32
    %c0_i32_1 = arith.constant 0 : i32
    return %c0_i32, %c0_i32_0 : i32, i32
  }
  func.func @transform_6(%arg0: i32) -> (i32, i32) {
    %c0_i32 = arith.constant 0 : i32
    %c0_i32_0 = arith.constant 0 : i32
    return %arg0, %c0_i32 : i32, i32
  }
}

</mosaic_0001>

<bundles_post_ra>
// kernel: tpu_custom_call.1
= control target key start
LH: loop header
LB: loop body
LE: loop exit
PB: predicated region body
PF: predicated region fallthrough
CT: control target
= control target key end

     0   :  { %11 = vsyncpa [#allocation3], 0  ;;  %s1394_s0 = inlined_call_operand.vmem [shape: s32[16,16], index: 0, kind: input, shape index: {}]   ;;  %s1395_s1 = inlined_call_operand.vmem [shape: f32[64,32], index: 1, kind: input, shape index: {}]   ;;  %s1396_s2 = inlined_call_operand.vmem [shape: f32[32,32], index: 2, kind: input, shape index: {}]   ;;  %s1397_s3 = inlined_call_operand.vmem [shape: f32[1,32], index: 3, kind: input, shape index: {}]   ;;  %s1398_s4 = inlined_call_operand.vmem [shape: f32[32,128], index: 4, kind: input, shape index: {}]   ;;  %s1399_s5 = inlined_call_operand.vmem [shape: f32[1,128], index: 5, kind: input, shape index: {}]   ;;  %s1400_s6 = inlined_call_operand.hbm [shape: f32[16,128], index: 6, kind: output, shape index: {}]  }
   0x1   :  { %13 = vsyncpa [#allocation3 + $0x1], 0  ;;  %s1150_s21 = smov 0   ;;  %s1152_s22 = smov 0  }
   0x2   :  { %s1154_s23 = smov 0   ;;  %s1156_s24 = smov 0  }
   0x3 LB: > { %s1171_s25 = sadd.s32 4294967295, %s1109_s24   ;;  %s897_s26 = sadd.s32 4294967294, %s1109_s24   ;;  %s1109_s24 = sphi %s1156_s24, %s1406_s24   ;;  %s1105_s23 = sphi %s1154_s23, %s1405_s23   ;;  %s1101_s22 = sphi %s1152_s22, %s1404_s22   ;;  %s1097_s21 = sphi %s1150_s21, %s1403_s21  }
   0x4   : > { %s1175_s27 = sadd.s32 1, %s1109_s24   ;;  %s157_s28 = sadd.s32 1, %s1105_s23 }
   0x5   : > { %s154_s29 = ssub.s32 %s1109_s24, %s1175_s27  ;;  %p167_p0 = scmp.ne.s32.totalorder %s1105_s23, %s1101_s22 }
   0x6   : > { %p155_p1 = scmp.eq.s32.totalorder %s154_s29, 0  ;;  %p168_p2 = scmp.eq.s32.totalorder %s1171_s25, 1 }
   0x7   : > { %p173_p3 = scmp.ne.s32.totalorder %s1101_s22, %s1097_s21  ;;  %p174_p4 = scmp.eq.s32.totalorder %s897_s26, 1 }
   0x8   : > { %s1186_s30 = scalar_select %p155_p1, %s1105_s23, %s157_s28  }
   0x9   : > { %p1188_p5 = por %p168_p2, %p167_p0  ;;  %p1192_p6 = por %p174_p4, %p173_p3 }
   0xa   : > { %p900_p7 = scmp.ge.s32.totalorder %s1109_s24, 1  ;;  %p214_p8 = scmp.lt.s32.totalorder %s1109_s24, 3 }
   0xc   : > { %p215_p9 = pnand %p900_p7, %p214_p8 }
   0xd   : > { %p243_p10 = scmp.lt.s32.totalorder (!%p215_p9), %s1171_s25, 1  ;;  %v277_v0 = vlaneseq (!%p215_p9)  ;;  %vm269_vm0 = vcmask (!%p215_p9), 130048   ;;  %v1111_v6 = vmov (!%p215_p9), 0.0   ;;  %v248_v35 = vld [vmem:[%s1395_s1] sm:$0xff] (!%p215_p9)  ;;  %v249_v36 = vld [vmem:[%s1395_s1 + $0x8] sm:$0xff] (!%p215_p9)  ;;  %v1112_v39 = vmov (!%p215_p9), 0.0|0.0  }
   0xe   : > { %218 = sbr.rel (%p215_p9) target bundleno = 1329 (0x531), region = 44  ;;  %v974_v37 = vpack.c.bf16 (!%p215_p9), %v249_v36, %v248_v35  ;;  %973 = vmatprep.subr.bf16.mxu0 (!%p215_p9), %v1112_v39  ;;  %985 = vmatprep.subr.bf16.mxu1 (!%p215_p9), %v1112_v39  ;;  %v250_v40 = vld [vmem:[%s1395_s1 + $0x10] sm:$0xff] (!%p215_p9)  ;;  %v251_v41 = vld [vmem:[%s1395_s1 + $0x18] sm:$0xff] (!%p215_p9)  ;;  %v252_v43 = vld [vmem:[%s1395_s1 + $0x20] sm:$0xff] (!%p215_p9)  ;;  %vm1113_vm3 = vmmov (!%p215_p9), 0   ;;  %vm487_vm5 = vcmask (!%p215_p9), 523264  }
   0xf   : > { %v1200_v1 = vshrl.u32 (!%p215_p9), %v277_v0, 7  ;;  %v1214_v22 = vand.u32 (!%p215_p9), 127, %v277_v0  ;;  %v977_v42 = vpack.c.bf16 (!%p215_p9), %v251_v41, %v250_v40  ;;  %v253_v44 = vld [vmem:[%s1395_s1 + $0x28] sm:$0xff] (!%p215_p9)  ;;  %v254_v46 = vld [vmem:[%s1395_s1 + $0x30] sm:$0xff] (!%p215_p9)  ;;  %v255_v47 = vld [vmem:[%s1395_s1 + $0x38] sm:$0xff] (!%p215_p9)  ;;  %948 = vmatprep.mubr.msk.f32.mxu0 (!%p215_p9), %vm1113_vm3, %v1111_v6  ;;  %959 = vmatprep.mubr.msk.f32.mxu1 (!%p215_p9), %vm1113_vm3, %v1111_v6  ;;  %vm568_vm15 = vcmask (!%p215_p9), 1041409  }
  0x10   : > { %975 = vmatpush3.bf16.msra.mxu0 (!%p215_p9), %v974_v37  ;;  %v980_v45 = vpack.c.bf16 (!%p215_p9), %v253_v44, %v252_v43  ;;  %v983_v48 = vpack.c.bf16 (!%p215_p9), %v255_v47, %v254_v46  ;;  %v256_v49 = vld [vmem:[%s1396_s2] sm:$0xff] (!%p215_p9)  ;;  %v257_v50 = vld [vmem:[%s1396_s2 + $0x8] sm:$0xff] (!%p215_p9)  ;;  %v258_v51 = vld [vmem:[%s1396_s2 + $0x10] sm:$0xff] (!%p215_p9)  ;;  %s240_s20 = sand.u32 (!%p215_p9), 1, %s1101_s22   ;;  %s910_s28 = sshll.u32 (!%p215_p9), %s1171_s25, 7 }
  0x11   : > { %v281_v2 = vsub.s32 (!%p215_p9), 0, %v1200_v1  ;;  %v292_v3 = vsub.s32 (!%p215_p9), 1, %v1200_v1  ;;  %v303_v10 = vsub.s32 (!%p215_p9), 2, %v1200_v1  ;;  %v314_v12 = vsub.s32 (!%p215_p9), 3, %v1200_v1  ;;  %976 = vmatprep.subr.bf16.mxu0 (!%p215_p9), %v1112_v39  ;;  %v259_v53 = vld [vmem:[%s1396_s2 + $0x18] sm:$0xff] (!%p215_p9)  ;;  %s901_s26 = sshll.u32 (!%p215_p9), %s240_s20, 3  ;;  %s1352_s12 = scalar_lea.hbm (!%p215_p9), %s1400_s6, %s910_s28 }
  0x12   : > { %v325_v14 = vsub.s32 (!%p215_p9), 4, %v1200_v1  ;;  %v336_v16 = vsub.s32 (!%p215_p9), 5, %v1200_v1  ;;  %v347_v18 = vsub.s32 (!%p215_p9), 6, %v1200_v1  ;;  %v358_v20 = vsub.s32 (!%p215_p9), 7, %v1200_v1  ;;  %s242_s29 = scalar_lea.vmem (!%p215_p9), [#allocation2], %s901_s26 }
  0x13   : > { %v986_v52 = vpack.c.bf16 (!%p215_p9), %v257_v50, %v256_v49  ;;  %v989_v54 = vpack.c.bf16 (!%p215_p9), %v259_v53, %v258_v51 }
  0x14   : > { %978 = vmatpush3.bf16.msra.mxu0 (!%p215_p9), %v977_v42 }
  0x15   : > { %s244_s9 = scalar_select %p243_p10, %s1171_s25, 1  ;;  %979 = vmatprep.subr.bf16.mxu0 %v1112_v39  ;;  %987 = vmatpush3.bf16.msra.mxu1 %v986_v52 }
  0x16   : > { %988 = vmatprep.subr.bf16.mxu1 %v1112_v39  ;;  %s1114_s25 = smov [#allocation2]  }
  0x17   : > { %s902_s10 = sshll.u32 %s244_s9, 3  ;;  %s838_s9 = sshll.u32 %s242_s29, 4  ;;  %s1354_s9 = int_to_ptr.vmem [resolvable:$true] %s838_s9 }
  0x18   : > { %s246_s13 = scalar_lea.vmem %s1394_s0, %s902_s10  ;;  %981 = vmatpush3.bf16.msra.mxu0 %v980_v45  ;;  %s1047_s14 = scalar_lea.vmem %s1354_s9, 128 }
  0x19   : > { %v247_v4 = vld [vmem:[%s246_s13] sm:$0xff]  ;;  %982 = vmatprep.subr.bf16.mxu0 %v1112_v39  ;;  %990 = vmatpush3.bf16.msra.mxu1 %v989_v54  ;;  %s825_s13 = scalar_lea.sflag [#allocation3], %s240_s20  ;;  %p1048_p11 = scmp.ne.s32.totalorder %s1354_s9, %s1047_s14 }
  0x1a   : > { %vm266_vm1 = vcmp.ne.s32.totalorder %v247_v4, 1  ;;  %v282_v5 = vrot.slane %v247_v4, %v281_v2  ;;  %v293_v9 = vrot.slane %v247_v4, %v292_v3  ;;  %v304_v11 = vrot.slane %v247_v4, %v303_v10  ;;  %991 = vmatprep.subr.bf16.mxu1 %v1112_v39  ;;  %s1051_s15 = sshll.u32 %s1114_s25, 4  ;;  %s1052_s15 = int_to_ptr.vmem [resolvable:$false] %s1051_s15 }
  0x1b   : > { %v903_v7 = vsel %vm266_vm1, 1.0, %v1111_v6  ;;  %v315_v13 = vrot.slane %v247_v4, %v314_v12  ;;  %v326_v15 = vrot.slane %v247_v4, %v325_v14  ;;  %v337_v17 = vrot.slane %v247_v4, %v336_v16  ;;  %p1049_p12 = pnand %p1048_p11, %p1188_p5  ;;  %s1053_s16 = scalar_lea.vmem %s1052_s15, 256 }
  0x1c   : > { %v270_v8 = vsel %vm269_vm0, %v903_v7, 0.0  ;;  %288 = vbcast.lane.b32.xlu1 %v282_v5, 264  ;;  %v348_v19 = vrot.slane %v247_v4, %v347_v18  ;;  %v359_v21 = vrot.slane %v247_v4, %v358_v20  ;;  %984 = vmatpush3.bf16.msra.mxu0 %v983_v48  ;;  %p1054_p0 = scmp.lt.s32.totalorder %s1354_s9, %s1052_s15  ;;  %p1055_p1 = scmp.lt.s32.totalorder %s1053_s16, %s1047_s14 }
  0x1d   : > { %271 = vadd.xlane.f32.xlu0 %v270_v8  ;;  %p1050_p13 = pneg %p1049_p12 }
  0x1e   : > { %p1056_p2 = por %p1055_p1, %p1054_p0 }
  0x20   : > { %295 = vbcast.lane.b32.xlu1 %v293_v9, 256  ;;  %p1057_p3 = pnand %p1056_p2, %p1050_p13 }
  0x24   : > { %299 = vbcast.lane.b32.xlu1 %v293_v9, 264 }
  0x28   : > { %306 = vbcast.lane.b32.xlu1 %v304_v11, 256 }
  0x2c   : > { %310 = vbcast.lane.b32.xlu1 %v304_v11, 264 }
  0x30   : > { %321 = vbcast.lane.b32.xlu1 %v315_v13, 264 }
  0x33   : > { %284 = vbcast.lane.b32.xlu0 %v282_v5, 256 }
  0x34   : > { %332 = vbcast.lane.b32.xlu1 %v326_v15, 264 }
  0x37   : > { %317 = vbcast.lane.b32.xlu0 %v315_v13, 256 }
  0x38   : > { %343 = vbcast.lane.b32.xlu1 %v337_v17, 264 }
  0x3b   : > { %328 = vbcast.lane.b32.xlu0 %v326_v15, 256 }
  0x3c   : > { %354 = vbcast.lane.b32.xlu1 %v348_v19, 264 }
  0x3f   : > { %339 = vbcast.lane.b32.xlu0 %v337_v17, 256 }
  0x40   : > { %365 = vbcast.lane.b32.xlu1 %v359_v21, 264 }
  0x43   : > { %350 = vbcast.lane.b32.xlu0 %v348_v19, 256 }
  0x47   : > { %361 = vbcast.lane.b32.xlu0 %v359_v21, 256 }
  0x8e   : > { %v1216_v23 = vpop.permute.xlu1 %288 }
  0x8f   : > { %vm368_vm2 = vcmp.eq.s32.totalorder %v1216_v23, %v1214_v22 }
  0x92   : > { %v296_v55 = vpop.permute.xlu1 %295 }
  0x93   : > { %vm369_vm6 = vcmp.eq.s32.totalorder %v296_v55, %v1214_v22 }
  0x96   : > { %v300_v56 = vpop.permute.xlu1 %299 }
  0x97   : > { %vm370_vm7 = vcmp.eq.s32.totalorder %v300_v56, %v1214_v22 }
  0x9a   : > { %v307_v57 = vpop.permute.xlu1 %306 }
  0x9b   : > { %vm371_vm8 = vcmp.eq.s32.totalorder %v307_v57, %v1214_v22 }
  0x9e   : > { %v311_v58 = vpop.permute.xlu1 %310 }
  0x9f   : > { %vm372_vm9 = vcmp.eq.s32.totalorder %v311_v58, %v1214_v22 }
  0xa2   : > { %v322_v60 = vpop.permute.xlu1 %321 }
  0xa3   : > { %vm374_vm11 = vcmp.eq.s32.totalorder %v322_v60, %v1214_v22 }
  0xa6   : > { %v1267_v62 = vpop.permute.xlu1 %332 }
  0xa7   : > { %vm376_vm13 = vcmp.eq.s32.totalorder %v1267_v62, %v1214_v22 }
  0xaa   : > { %v272_v24 = vpop.xlane.xlu0 %271  ;;  %v1269_v0 = vpop.permute.xlu1 %343 }
  0xab   : > { %v273_v25 = vadd.f32 1e-07, %v272_v24  ;;  %vm378_vm0 = vcmp.eq.s32.totalorder %v1269_v0, %v1214_v22 }
  0xad   : > { %1039 = vrcp.f32 %v273_v25 }
  0xae   : > { %v285_v59 = vpop.permute.xlu0 %284 }
  0xaf   : > { %vm367_vm4 = vcmp.eq.s32.totalorder %v285_v59, %v1214_v22 }
  0xb2   : > { %v318_v61 = vpop.permute.xlu0 %317 }
  0xb3   : > { %vm373_vm10 = vcmp.eq.s32.totalorder %v318_v61, %v1214_v22 }
  0xb6   : > { %v329_v63 = vpop.permute.xlu0 %328 }
  0xb7   : > { %v1040_v26 = vpop.eup %1039  ;;  %vm375_vm12 = vcmp.eq.s32.totalorder %v329_v63, %v1214_v22 }
  0xb8   : > { %v276_v27 = vmul.f32 %v1040_v26, %v903_v7 }
  0xba   : > { %v397_v28 = vrot.slane %v276_v27, %v292_v3  ;;  %v386_v29 = vrot.slane %v276_v27, %v281_v2  ;;  %v408_v30 = vrot.slane %v276_v27, %v303_v10  ;;  %v419_v31 = vrot.slane %v276_v27, %v314_v12  ;;  %v1271_v1 = vpop.permute.xlu0 %339  ;;  %v1273_v2 = vpop.permute.xlu1 %354 }
  0xbb   : > { %v430_v32 = vrot.slane %v276_v27, %v325_v14  ;;  %v441_v33 = vrot.slane %v276_v27, %v336_v16  ;;  %v452_v34 = vrot.slane %v276_v27, %v347_v18  ;;  %v463_v38 = vrot.slane %v276_v27, %v358_v20 }
  0xbc   : > { %399 = vbcast.lane.b32.xlu0 %v397_v28, 256  ;;  %388 = vbcast.lane.b32.xlu1 %v386_v29, 256  ;;  %vm377_vm14 = vcmp.eq.s32.totalorder %v1271_v1, %v1214_v22 }
  0xbe   : > { %v1275_v3 = vpop.permute.xlu0 %350  ;;  %v1277_v4 = vpop.permute.xlu1 %365 }
  0xbf   : > { %vm379_vm1 = vcmp.eq.s32.totalorder %v1275_v3, %v1214_v22 }
  0xc0   : > { %410 = vbcast.lane.b32.xlu0 %v408_v30, 256  ;;  %392 = vbcast.lane.b32.xlu1 %v386_v29, 264 }
  0xc2   : > { %v1279_v5 = vpop.permute.xlu0 %361 }
  0xc4   : > { %421 = vbcast.lane.b32.xlu0 %v419_v31, 256  ;;  %403 = vbcast.lane.b32.xlu1 %v397_v28, 264 }
  0xc8   : > { %432 = vbcast.lane.b32.xlu0 %v430_v32, 256  ;;  %414 = vbcast.lane.b32.xlu1 %v408_v30, 264 }
  0xcc   : > { %443 = vbcast.lane.b32.xlu0 %v441_v33, 256  ;;  %425 = vbcast.lane.b32.xlu1 %v419_v31, 264 }
  0xd0   : > { %454 = vbcast.lane.b32.xlu0 %v452_v34, 256  ;;  %436 = vbcast.lane.b32.xlu1 %v430_v32, 264 }
  0xd4   : > { %465 = vbcast.lane.b32.xlu0 %v463_v38, 256  ;;  %447 = vbcast.lane.b32.xlu1 %v441_v33, 264 }
  0xd8   : > { %458 = vbcast.lane.b32.xlu1 %v452_v34, 264 }
  0xdc   : > { %469 = vbcast.lane.b32.xlu1 %v463_v38, 264 }
 0x12e   : > { %v389_v7 = vpop.permute.xlu1 %388  ;;  %v400_v8 = vpop.permute.xlu0 %399 }
 0x12f   : > { %v471_v9 = vsel %vm367_vm4, %v389_v7, 0.0  ;;  %v473_v15 = vsel %vm369_vm6, %v400_v8, 0.0  ;;  %vm380_vm4 = vcmp.eq.s32.totalorder %v1273_v2, %v1214_v22  ;;  %vm381_vm6 = vcmp.eq.s32.totalorder %v1279_v5, %v1214_v22 }
 0x130   : > { %v488_v13 = vsel %vm487_vm5, %v471_v9, 0.0  ;;  %v497_v21 = vsel %vm487_vm5, %v473_v15, 0.0 }
 0x132   : > { %v393_v10 = vpop.permute.xlu1 %392  ;;  %v411_v11 = vpop.permute.xlu0 %410 }
 0x133   : > { %v472_v12 = vsel %vm368_vm2, %v393_v10, 0.0  ;;  %v475_v25 = vsel %vm371_vm8, %v411_v11, 0.0  ;;  %vm570_vm2 = vcmask 1042434   ;;  %vm382_vm8 = vcmp.eq.s32.totalorder %v1277_v4, %v1214_v22 }
 0x134   : > { %v489_v14 = vsel %vm487_vm5, %v472_v12, 0.0  ;;  %v506_v32 = vsel %vm487_vm5, %v475_v25, 0.0 }
 0x135   : > { %v490_v16 = vadd.f32 %v489_v14, %v488_v13 }
 0x136   : > { %v404_v17 = vpop.permute.xlu1 %403  ;;  %v422_v18 = vpop.permute.xlu0 %421 }
 0x137   : > { %v491_v19 = vrot.slane %v490_v16, 4  ;;  %v474_v20 = vsel %vm370_vm7, %v404_v17, 0.0  ;;  %v477_v36 = vsel %vm373_vm10, %v422_v18, 0.0  ;;  %vm572_vm7 = vcmask 1043459  }
 0x138   : > { %v498_v23 = vsel %vm487_vm5, %v474_v20, 0.0  ;;  %v515_v45 = vsel %vm487_vm5, %v477_v36, 0.0  ;;  %vm576_vm10 = vcmask 1045509  }
 0x139   : > { %v492_v24 = vadd.f32 %v491_v19, %v490_v16  ;;  %v499_v26 = vadd.f32 %v498_v23, %v497_v21 }
 0x13a   : > { %v415_v27 = vpop.permute.xlu1 %414  ;;  %v433_v28 = vpop.permute.xlu0 %432 }
 0x13b   : > { %v493_v29 = vrot.slane %v492_v24, 2  ;;  %v500_v30 = vrot.slane %v499_v26, 4  ;;  %v476_v31 = vsel %vm372_vm9, %v415_v27, 0.0  ;;  %v479_v49 = vsel %vm375_vm12, %v433_v28, 0.0 }
 0x13c   : > { %v507_v33 = vsel %vm487_vm5, %v476_v31, 0.0  ;;  %v524_v57 = vsel %vm487_vm5, %v479_v49, 0.0  ;;  %vm574_vm9 = vcmask 1044484   ;;  %vm580_vm12 = vcmask 1047559  }
 0x13d   : > { %v494_v34 = vadd.f32 %v493_v29, %v492_v24  ;;  %v501_v35 = vadd.f32 %v500_v30, %v499_v26  ;;  %v508_v37 = vadd.f32 %v507_v33, %v506_v32 }
 0x13e   : > { %v426_v38 = vpop.permute.xlu1 %425  ;;  %v444_v40 = vpop.permute.xlu0 %443 }
 0x13f   : > { %v502_v41 = vrot.slane %v501_v35, 2  ;;  %v509_v42 = vrot.slane %v508_v37, 4  ;;  %v478_v43 = vsel %vm374_vm11, %v426_v38, 0.0  ;;  %v495_v44 = vrot.slane %v494_v34, 1 }
 0x140   : > { %v516_v46 = vsel %vm487_vm5, %v478_v43, 0.0  ;;  %v481_v58 = vsel %vm377_vm14, %v444_v40, 0.0  ;;  %vm578_vm11 = vcmask 1046534  }
 0x141   : > { %v503_v47 = vadd.f32 %v502_v41, %v501_v35  ;;  %v510_v48 = vadd.f32 %v509_v42, %v508_v37  ;;  %v517_v50 = vadd.f32 %v516_v46, %v515_v45  ;;  %v496_v56 = vadd.f32 %v495_v44, %v494_v34 }
 0x142   : > { %v437_v51 = vpop.permute.xlu1 %436  ;;  %v455_v60 = vpop.permute.xlu0 %454  ;;  %v533_v12 = vsel %vm487_vm5, %v481_v58, 0.0 }
 0x143   : > { %v504_v52 = vrot.slane %v503_v47, 1  ;;  %v511_v53 = vrot.slane %v510_v48, 2  ;;  %v518_v54 = vrot.slane %v517_v50, 4  ;;  %v480_v55 = vsel %vm376_vm13, %v437_v51, 0.0 }
 0x144   : > { %v525_v59 = vsel %vm487_vm5, %v480_v55, 0.0  ;;  %v483_v13 = vsel %vm379_vm1, %v455_v60, 0.0  ;;  %vm660_vm13 = vcmask 261120   ;;  %v261_v60 = vld [vmem:[%s1398_s4] sm:$0xff] }
 0x145   : > { %v505_v61 = vadd.f32 %v504_v52, %v503_v47  ;;  %v512_v63 = vadd.f32 %v511_v53, %v510_v48  ;;  %v519_v7 = vadd.f32 %v518_v54, %v517_v50  ;;  %v526_v62 = vadd.f32 %v525_v59, %v524_v57 }
 0x146   : > { %v448_v1 = vpop.permute.xlu1 %447  ;;  %v466_v3 = vpop.permute.xlu0 %465  ;;  %v542_v25 = vsel %vm487_vm5, %v483_v13, 0.0 }
 0x147   : > { %v569_v8 = vsel %vm568_vm15, %v505_v61, %v496_v56  ;;  %v513_v9 = vrot.slane %v512_v63, 1  ;;  %v520_v10 = vrot.slane %v519_v7, 2  ;;  %v527_v11 = vrot.slane %v526_v62, 4  ;;  %v262_v61 = vld [vmem:[%s1398_s4 + $0x8] sm:$0xff] }
 0x148   : > { %v482_v14 = vsel %vm378_vm0, %v448_v1, 0.0  ;;  %v485_v30 = vsel %vm381_vm6, %v466_v3, 0.0 }
 0x149   : > { %v514_v15 = vadd.f32 %v513_v9, %v512_v63  ;;  %v521_v16 = vadd.f32 %v520_v10, %v519_v7  ;;  %v528_v17 = vadd.f32 %v527_v11, %v526_v62  ;;  %v534_v18 = vsel %vm487_vm5, %v482_v14, 0.0  ;;  %v263_v63 = vld [vmem:[%s1398_s4 + $0x10] sm:$0xff]  ;;  %v264_v62 = vld [vmem:[%s1398_s4 + $0x18] sm:$0xff] }
 0x14a   : > { %v535_v0 = vadd.f32 %v534_v18, %v533_v12  ;;  %v459_v19 = vpop.permute.xlu1 %458  ;;  %v551_v37 = vsel %vm487_vm5, %v485_v30, 0.0  ;;  %v992_v7 = vpack.c.bf16 %v262_v61, %v261_v60  ;;  %v995_v1 = vpack.c.bf16 %v264_v62, %v263_v63  ;;  %v907_v12 = vld [vmem:[%s1399_s5] ss:$0 sm:$0xff] }
 0x14b   : > { %v571_v20 = vsel %vm570_vm2, %v514_v15, %v569_v8  ;;  %v522_v21 = vrot.slane %v521_v16, 1  ;;  %v529_v23 = vrot.slane %v528_v17, 2  ;;  %v484_v24 = vsel %vm380_vm4, %v459_v19, 0.0 }
 0x14c   : > { %v536_v26 = vrot.slane %v535_v0, 4  ;;  %v543_v27 = vsel %vm487_vm5, %v484_v24, 0.0 }
 0x14d   : > { %v523_v28 = vadd.f32 %v522_v21, %v521_v16  ;;  %v530_v29 = vadd.f32 %v529_v23, %v528_v17  ;;  %v544_v2 = vadd.f32 %v543_v27, %v542_v25 }
 0x14e   : > { %v537_v5 = vadd.f32 %v536_v26, %v535_v0  ;;  %v470_v31 = vpop.permute.xlu1 %469 }
 0x14f   : > { %v531_v32 = vrot.slane %v530_v29, 1  ;;  %v545_v33 = vrot.slane %v544_v2, 4  ;;  %v486_v34 = vsel %vm382_vm8, %v470_v31, 0.0  ;;  %v573_v35 = vsel %vm572_vm7, %v523_v28, %v571_v20 }
 0x150   : > { %v538_v36 = vrot.slane %v537_v5, 2  ;;  %v552_v38 = vsel %vm487_vm5, %v486_v34, 0.0 }
 0x151   : > { %v532_v40 = vadd.f32 %v531_v32, %v530_v29  ;;  %v546_v41 = vadd.f32 %v545_v33, %v544_v2  ;;  %v553_v42 = vadd.f32 %v552_v38, %v551_v37 }
 0x152   : > { %v539_v43 = vadd.f32 %v538_v36, %v537_v5 }
 0x153   : > { %v547_v44 = vrot.slane %v546_v41, 2  ;;  %v554_v45 = vrot.slane %v553_v42, 4  ;;  %v575_v46 = vsel %vm574_vm9, %v532_v40, %v573_v35 }
 0x154   : > { %v540_v22 = vrot.slane %v539_v43, 1 }
 0x155   : > { %v548_v4 = vadd.f32 %v547_v44, %v546_v41  ;;  %v555_v47 = vadd.f32 %v554_v45, %v553_v42 }
 0x156   : > { %v541_v48 = vadd.f32 %v540_v22, %v539_v43 }
 0x157   : > { %v549_v49 = vrot.slane %v548_v4, 1  ;;  %v556_v50 = vrot.slane %v555_v47, 2 }
 0x158   : > { %v577_v51 = vsel %vm576_vm10, %v541_v48, %v575_v46 }
 0x159   : > { %v550_v52 = vadd.f32 %v549_v49, %v548_v4  ;;  %v557_v53 = vadd.f32 %v556_v50, %v555_v47 }
 0x15b   : > { %v558_v54 = vrot.slane %v557_v53, 1  ;;  %v579_v55 = vsel %vm578_vm11, %v550_v52, %v577_v51 }
 0x15d   : > { %v559_v56 = vadd.f32 %v558_v54, %v557_v53 }
 0x15f   : > { %v581_v57 = vsel %vm580_vm12, %v559_v56, %v579_v55 }
 0x160   : > { %949 = vmatmul.mubr.msk.f32.vlgmr.msra.gmra.mrb[0].mxu0 %vm487_vm5, %v581_v57 }
 0x233   : > { %v650_v58 = vpop.f32.mrb[0].mxu0 }
 0x234   : > { %v950_v59 = vpop.f32.mrb[1].mxu0  ;;  %960 = vmatmul.mubr.msk.f32.vlgmr.msra.gmra.mrb[0].mxu1 %vm660_vm13, %v650_v58 }
 0x235   : > { %970 = vmatprep.mubr.msk.f32.mxu1 %vm1113_vm3, %v1111_v6  ;;  %993 = vmatpush3.bf16.msra.mxu1 %v992_v7  ;;  %v905_v6 = vld [vmem:[%s1397_s3] ss:$0 sm:$0xff] }
 0x236   : > { %994 = vmatprep.subr.bf16.mxu1 %v1112_v39 }
 0x239   : > { %996 = vmatpush3.bf16.msra.mxu1 %v995_v1 }
 0x307   : > { %v730_v8 = vpop.f32.mrb[0].mxu1 }
 0x308   : > { %v731_v9 = vadd.f32 %v905_v6, %v730_v8  ;;  %v961_v10 = vpop.f32.mrb[1].mxu1 }
 0x30a   : > { %1041 = vtanh.f32 %v731_v9 }
 0x314   : > { %v1042_v11 = vpop.eup %1041 }
 0x315   : > { %971 = vmatmul.mubr.msk.f32.vlgmr.msra.gmra.mrb[2].mxu1 %vm660_vm13, %v1042_v11 }
 0x3e8   : > { %v810_v13 = vpop.f32.mrb[2].mxu1 }
 0x3e9   : > { %v811_v39 = vadd.f32 %v907_v12, %v810_v13  ;;  %v972_v14 = vpop.f32.mrb[3].mxu1 }
 0x3eb   : > { %814 = vmax.xlane.f32.xlu0 %v811_v39 }
 0x478   : > { %v815_v15 = vpop.xlane.xlu0 %814 }
 0x479   : > { %v816_v16 = vsub.f32 %v811_v39, %v815_v15 }
 0x47b   : > { %v817_v17 = vmul.f32 1.442695, %v816_v16 }
 0x47d   : > { %1043 = vpow2.f32 %v817_v17 }
 0x487   : > { %v1044_v18 = vpop.eup %1043 }
 0x488   : > { %819 = vadd.xlane.f32.xlu1 %v1044_v18 }
 0x515   : > { %v820_v0 = vpop.xlane.xlu1 %819 }
 0x516   : > { %1045 = vrcp.f32 %v820_v0 }
 0x520   : > { %v1046_v3 = vpop.eup %1045 }
 0x521   : > { %v822_v19 = vmul.f32 %v1046_v3, %v1044_v18 }
 0x523   : > { %823 = vst [vmem:[%s242_s29] sm:$0xff] %v822_v19 }
 0x524   : > { %1060 = shalt.err (!%p1057_p3)
}
 0x525   : > { %s1061_s17 = scalar_lea.hbm %s1352_s12, 128  ;;  %s1065_s20 = scalar_lea.hbm %s1400_s6, 256 }
 0x526   : > { %p1062_p4 = scmp.ne.s32.totalorder %s1352_s12, %s1061_s17  ;;  %p1066_p9 = scmp.lt.u32.totalorder %s1352_s12, %s1400_s6 }
 0x527   : > { %p1067_p10 = scmp.lt.u32.totalorder %s1065_s20, %s1061_s17  ;;  %p1069_p12 = scmp.lt.u32.totalorder %s1061_s17, %s1352_s12 }
 0x528   : > { %p1063_p7 = pnand %p1062_p4, %p1188_p5 }
 0x529   : > { %p1068_p11 = por %p1067_p10, %p1066_p9 }
 0x52a   : > { %p1064_p8 = pneg %p1063_p7 }
 0x52b   : > { %p1070_p13 = por %p1069_p12, %p1068_p11 }
 0x52d   : > { %p1071_p0 = pnand %p1070_p13, %p1064_p8 }
 0x52f   : > { %1074 = shalt.err (!%p1071_p0)
}
 0x530   : > { %997 = dma.vmem_to_hbm [thread:$0]  (%p1188_p5), %s1354_s9, 128, %s1352_s12, %s825_s13  }
 0x531 PF: > { %p1003_p1 = scmp.ge.s32.totalorder %s1109_s24, 2  ;;  %s850_s29 = sand.u32 1, %s1097_s21  }
 0x532   : > { %s851_s10 = scalar_lea.sflag [#allocation3], %s850_s29 }
 0x533   : > { %p1000_p2 = pnand %p1003_p1, %p1192_p6 }
 0x535   : > { %1092 = dma.done.wait (!%p1000_p2), %s851_s10, 128  }
 0x536   : > { %1094 = vsyncadd (!%p1000_p2), %s851_s10, 4294967168  ;;  %p16_p3 = scmp.ge.s32.totalorder %s1175_s27, 4   ;;  %s1403_s21 = smov %s1101_s22 }
 0x537   : > { %s1404_s22 = smov %s1105_s23  ;;  %s1405_s23 = smov %s1186_s30 }
 0x538   : > { %s1406_s24 = smov %s1175_s27  ;;  %18 = sbr.rel (!%p16_p3) target bundleno = 3 (0x3), region = 79 }
 0x53f   :  { %856 = vsyncpa [#allocation3], 1 }
 0x540   :  { %858 = vsyncpa [#allocation3 + $0x1], 1 }

</bundles_post_ra>
